<compile_context>
chip_gen: v7x
topology: tpu7x:2x2x1
jax: 0.10.0
libtpu: 0.0.40
codegen_flags: <defaults>
</compile_context>

<pallas_src>
import functools

import jax
import jax.numpy as jnp
from jax import lax
from jax.experimental import pallas as pl
from jax.experimental.pallas import tpu as pltpu


# -----------------------------------------------------------------------------
# Host-side precompute: per-level column rows (cached, tiny)
# -----------------------------------------------------------------------------
def _make_level_rows(base_anchors, grid_w, stride_h, stride_w):
    """Returns (row_mul, col_add), each (1, W) f32 with W = grid_w * A * 4.

    Column j encodes (gx, a, c) with coordinate c fastest:
        c = j % 4, a = (j // 4) % A, gx = j // (4*A)
    col_add[j] = base[a, c] + (gx * stride_w if c is an x coord else 0)
    row_mul[j] = 0 if c is an x coord else stride_h
    so  anchors[gy, j] = gy * row_mul[j] + col_add[j].
    """
    base = jnp.asarray(base_anchors, jnp.float32)          # (A, 4)
    A = int(base.shape[0])
    W = grid_w * A * 4
    pat = jnp.tile(base.reshape(-1), grid_w)                               # (W,)
    x_shift = jnp.repeat(
        jnp.arange(grid_w, dtype=jnp.float32) * float(stride_w), A * 4)    # (W,)
    is_x = jnp.tile(jnp.array([1.0, 0.0, 1.0, 0.0], jnp.float32),
                    A * grid_w)                                            # (W,)
    col_add = (pat + x_shift * is_x).reshape(1, W)
    row_mul = (float(stride_h) * (1.0 - is_x)).reshape(1, W)
    return row_mul, col_add


def _sublane_multiple(dtype):
    itemsize = jnp.dtype(dtype).itemsize
    return {4: 8, 2: 16, 1: 32}.get(itemsize, 8)


# -----------------------------------------------------------------------------
# Pallas kernels
# -----------------------------------------------------------------------------
def _fused_levels_kernel(*refs, num_levels):
    """Single grid step; writes every level's (gh_i, W_i) slab in one launch."""
    in_refs = refs[: 2 * num_levels]
    out_refs = refs[2 * num_levels:]
    for lvl in range(num_levels):
        row_mul = in_refs[2 * lvl][...]       # (1, W) -> broadcasts over sublanes
        col_add = in_refs[2 * lvl + 1][...]   # (1, W)
        o_ref = out_refs[lvl]
        gy = lax.broadcasted_iota(jnp.int32, o_ref.shape, 0).astype(jnp.float32)
        o_ref[...] = (gy * row_mul + col_add).astype(o_ref.dtype)


def _tiled_level_kernel(row_mul_ref, col_add_ref, o_ref, *, tile_rows):
    """Row-tiled variant for large levels (grid over gh, marked "parallel")."""
    row0 = pl.program_id(0) * tile_rows
    gy = (row0 + lax.broadcasted_iota(jnp.int32, o_ref.shape, 0)).astype(jnp.float32)
    o_ref[...] = (gy * row_mul_ref[...] + col_add_ref[...]).astype(o_ref.dtype)


# -----------------------------------------------------------------------------
# pallas_call wrappers
# -----------------------------------------------------------------------------
def _fused_grid_anchors(level_params, out_dtype):
    """level_params: list of (gh, W, row_mul(1,W), col_add(1,W)). One launch total."""
    num_levels = len(level_params)
    itemsize = jnp.dtype(out_dtype).itemsize
    inputs, in_specs, out_shapes, out_specs = [], [], [], []
    flops = 0
    bytes_accessed = 0
    for gh, W, row_mul, col_add in level_params:
        inputs += [row_mul, col_add]
        in_specs += [pl.BlockSpec((1, W), lambda i: (0, 0)),
                     pl.BlockSpec((1, W), lambda i: (0, 0))]
        out_shapes.append(jax.ShapeDtypeStruct((gh, W), out_dtype))
        out_specs.append(pl.BlockSpec((gh, W), lambda i: (0, 0)))
        flops += 2 * gh * W
        bytes_accessed += gh * W * itemsize + 2 * W * 4

    kernel = functools.partial(_fused_levels_kernel, num_levels=num_levels)
    outs = pl.pallas_call(
        kernel,
        out_shape=tuple(out_shapes),
        grid=(1,),
        in_specs=in_specs,
        out_specs=tuple(out_specs),
        compiler_params=pltpu.CompilerParams(dimension_semantics=("arbitrary",)),
        cost_estimate=pl.CostEstimate(
            flops=int(flops), transcendentals=0, bytes_accessed=int(bytes_accessed)),
    )(*inputs)
    if not isinstance(outs, (tuple, list)):
        outs = (outs,)
    return list(outs)


def _tiled_grid_anchors_one_level(gh, W, row_mul, col_add, out_dtype,
                                  tile_rows=None):
    """Per-level call, row-tiled so each output block is ~<=2 MiB (v5e-safe) and the
    grid axis is "parallel" (uses both v7x TensorCores, overlaps DMA writeback)."""
    itemsize = jnp.dtype(out_dtype).itemsize
    sub = _sublane_multiple(out_dtype)
    if tile_rows is None:
        target_bytes = 2 * 1024 * 1024
        tile_rows = max(sub, (target_bytes // max(W * itemsize, 1)) // sub * sub)
    else:
        tile_rows = max(sub, (int(tile_rows) + sub - 1) // sub * sub)
    if tile_rows >= gh:
        tile_rows = gh                      # full-array block (exempt from 8-row rule)
    n_steps = pl.cdiv(gh, tile_rows)

    kernel = functools.partial(_tiled_level_kernel, tile_rows=tile_rows)
    out = pl.pallas_call(
        kernel,
        out_shape=jax.ShapeDtypeStruct((gh, W), out_dtype),
        grid=(n_steps,),
        in_specs=[pl.BlockSpec((1, W), lambda i: (0, 0)),   # constant index_map: no re-DMA
                  pl.BlockSpec((1, W), lambda i: (0, 0))],
        out_specs=pl.BlockSpec((tile_rows, W), lambda i: (i, 0)),
        compiler_params=pltpu.CompilerParams(dimension_semantics=("parallel",)),
        cost_estimate=pl.CostEstimate(
            flops=int(2 * gh * W), transcendentals=0,
            bytes_accessed=int(gh * W * itemsize + 2 * W * 4)),
    )(row_mul, col_add)
    return out


# Total-output-bytes threshold for the single-launch fused path: keep the
# double-buffered full-level blocks comfortably under v5e's 16 MiB scoped VMEM.
_FUSE_LIMIT_BYTES = 4 * 1024 * 1024


# -----------------------------------------------------------------------------
# Module wrapper mirroring the PyTorch AnchorGenerator
# -----------------------------------------------------------------------------
class ImageList:
    """Minimal stand-in for torchvision ImageList (.tensors, .image_sizes)."""

    def __init__(self, tensors, image_sizes):
        self.tensors = tensors
        self.image_sizes = image_sizes


class AnchorGeneratorPallas:
    def __init__(self, sizes=(128, 256, 512), aspect_ratios=(0.5, 1.0, 2.0)):
        if not isinstance(sizes[0], (list, tuple)):
            sizes = tuple((s,) for s in sizes)
        if not isinstance(aspect_ratios[0], (list, tuple)):
            aspect_ratios = (aspect_ratios,) * len(sizes)
        assert len(sizes) == len(aspect_ratios)
        self.sizes = sizes
        self.aspect_ratios = aspect_ratios
        self.cell_anchors = None
        self._cache = {}
        # testing / tuning knobs
        self._force_tiled = False
        self._force_tile_rows = None

    @staticmethod
    def generate_anchors(scales, aspect_ratios, dtype=jnp.float32):
        scales = jnp.asarray(scales, dtype=dtype)
        aspect_ratios = jnp.asarray(aspect_ratios, dtype=dtype)
        h_ratios = jnp.sqrt(aspect_ratios)
        w_ratios = 1.0 / h_ratios
        ws = (w_ratios[:, None] * scales[None, :]).reshape(-1)
        hs = (h_ratios[:, None] * scales[None, :]).reshape(-1)
        base_anchors = jnp.stack([-ws, -hs, ws, hs], axis=1) / 2.0
        return jnp.round(base_anchors)

    def set_cell_anchors(self, dtype):
        if self.cell_anchors is not None:
            return
        # O(A*4) scalar setup, computed once in plain JAX (mirrors PyTorch's cached
        # cell_anchors).  Cell anchors are kept in f32: like PyTorch, the f32 shifts
        # promote the sum to f32 anyway (tiny rounding delta vs torchvision only when
        # features are fp16/bf16, where torchvision rounds cell anchors first).
        self.cell_anchors = [
            self.generate_anchors(s, a, jnp.float32)
            for s, a in zip(self.sizes, self.aspect_ratios)
        ]

    def num_anchors_per_location(self):
        return [len(s) * len(a) for s, a in zip(self.sizes, self.aspect_ratios)]

    def grid_anchors(self, grid_sizes, strides, out_dtype=jnp.float32):
        assert self.cell_anchors is not None
        itemsize = jnp.dtype(out_dtype).itemsize
        level_params = []        # (gh, W, row_mul, col_add, A)
        for (gh, gw), (sh, sw), base in zip(grid_sizes, strides, self.cell_anchors):
            gh, gw, sh, sw = int(gh), int(gw), int(sh), int(sw)
            A = int(base.shape[0])
            row_mul, col_add = _make_level_rows(base, gw, sh, sw)
            level_params.append((gh, gw * A * 4, row_mul, col_add, A))

        total_bytes = sum(gh * W * itemsize for gh, W, _, _, _ in level_params)
        if (not self._force_tiled) and total_bytes <= _FUSE_LIMIT_BYTES:
            slabs = _fused_grid_anchors(
                [(gh, W, rm, ca) for gh, W, rm, ca, _ in level_params], out_dtype)
        else:
            slabs = [
                _tiled_grid_anchors_one_level(gh, W, rm, ca, out_dtype,
                                              tile_rows=self._force_tile_rows)
                for gh, W, rm, ca, _ in level_params
            ]

        anchors = []
        for (gh, W, _, _, A), slab in zip(level_params, slabs):
            gw = W // (A * 4)
            # Row-major order is already (gy, gx, a, c): free contiguous reshape,
            # no padded-slot slice, no transpose.
            anchors.append(slab.reshape(gh * gw * A, 4))
        return anchors

    def cached_grid_anchors(self, grid_sizes, strides, out_dtype):
        key = str(grid_sizes) + str(strides) + str(jnp.dtype(out_dtype))
        if key in self._cache:
            return self._cache[key]
        anchors = self.grid_anchors(grid_sizes, strides, out_dtype)
        self._cache[key] = anchors
        return anchors

    def forward(self, image_list, feature_maps):
        grid_sizes = [tuple(int(d) for d in fm.shape[-2:]) for fm in feature_maps]
        image_size = image_list.tensors.shape[-2:]
        dtype = feature_maps[0].dtype
        strides = [(int(image_size[0]) // g[0], int(image_size[1]) // g[1])
                   for g in grid_sizes]
        self.set_cell_anchors(dtype)
        # PyTorch computes f32 shifts + dtype cell anchors -> promotes; mirror that.
        out_dtype = jnp.promote_types(jnp.float32, dtype)
        anchors_over_all_feature_maps = self.cached_grid_anchors(
            grid_sizes, strides, out_dtype)
        # Anchors are identical for every image: concat ONCE, return N references
        # (no per-image concatenate/cast duplication).
        if len(anchors_over_all_feature_maps) == 1:
            anchors_all = anchors_over_all_feature_maps[0]
        else:
            anchors_all = jnp.concatenate(anchors_over_all_feature_maps, axis=0)
        anchors = [anchors_all for _ in image_list.image_sizes]
        self._cache.clear()
        return anchors

    __call__ = forward


# -----------------------------------------------------------------------------
# Pure-JAX reference (mirrors the PyTorch meshgrid math) for the self-test
# -----------------------------------------------------------------------------
def _reference_forward(sizes, aspect_ratios, image_list, feature_maps):
    if not isinstance(sizes[0], (list, tuple)):
        sizes = tuple((s,) for s in sizes)
    if not isinstance(aspect_ratios[0], (list, tuple)):
        aspect_ratios = (aspect_ratios,) * len(sizes)
    grid_sizes = [tuple(int(d) for d in fm.shape[-2:]) for fm in feature_maps]
    image_size = image_list.tensors.shape[-2:]
    strides = [(int(image_size[0]) // g[0], int(image_size[1]) // g[1])
               for g in grid_sizes]
    per_level = []
    for (gh, gw), (sh, sw), s, ar in zip(grid_sizes, strides, sizes, aspect_ratios):
        base = AnchorGeneratorPallas.generate_anchors(s, ar)
        sx = jnp.arange(gw, dtype=jnp.float32) * sw
        sy = jnp.arange(gh, dtype=jnp.float32) * sh
        yy, xx = jnp.meshgrid(sy, sx, indexing="ij")
        xx = xx.reshape(-1)
        yy = yy.reshape(-1)
        shifts = jnp.stack((xx, yy, xx, yy), axis=1)
        per_level.append((shifts[:, None, :] + base[None, :, :]).reshape(-1, 4))
    all_anchors = jnp.concatenate(per_level, axis=0)
    return [all_anchors for _ in image_list.image_sizes]


if __name__ == "__main__":
    key = jax.random.PRNGKey(0)
    k1, k2, k3, k4 = jax.random.split(key, 4)

    # ---- test 1: fused single-launch path (tiny FPN head) ----
    N = 2
    images = jax.random.normal(k1, (N, 3, 64, 64), dtype=jnp.float32)
    feature_maps = [
        jax.random.normal(k2, (N, 4, 16, 16), dtype=jnp.float32),
        jax.random.normal(k3, (N, 4, 8, 8), dtype=jnp.float32),
        jax.random.normal(k4, (N, 4, 4, 4), dtype=jnp.float32),
    ]
    image_list = ImageList(images, [(64, 64)] * N)

    gen = AnchorGeneratorPallas(sizes=(128, 256, 512),
                                aspect_ratios=(0.5, 1.0, 2.0))
    anchors = gen(image_list, feature_maps)
    anchors = jax.block_until_ready(anchors)

    expected_rows = sum(fm.shape[-2] * fm.shape[-1] * 3 for fm in feature_maps)
    assert len(anchors) == N
    assert all(a.shape == (expected_rows, 4) for a in anchors)

    ref = _reference_forward(gen.sizes, gen.aspect_ratios, image_list, feature_maps)
    for got, want in zip(anchors, ref):
        assert jnp.allclose(got, want, atol=1e-5), "mismatch vs reference anchors"

    # ---- test 2: row-tiled per-level path (large-level fallback, "parallel" grid) ----
    images2 = jnp.zeros((1, 3, 128, 128), jnp.float32)
    feature_maps2 = [
        jnp.zeros((1, 4, 32, 32), jnp.float32),
        jnp.zeros((1, 4, 16, 16), jnp.float32),
        jnp.zeros((1, 4, 8, 8), jnp.float32),
    ]
    image_list2 = ImageList(images2, [(128, 128)])

    gen2 = AnchorGeneratorPallas(sizes=(32, 64, 128),
                                 aspect_ratios=(0.5, 1.0, 2.0))
    gen2._force_tiled = True
    gen2._force_tile_rows = 8          # 32/16/8 rows -> 4/2/1 grid steps
    anchors2 = jax.block_until_ready(gen2(image_list2, feature_maps2))
    ref2 = _reference_forward(gen2.sizes, gen2.aspect_ratios, image_list2,
                              feature_maps2)
    for got, want in zip(anchors2, ref2):
        assert got.shape == want.shape
        assert jnp.allclose(got, want, atol=1e-5), "mismatch (tiled path)"

    print("KERNEL_OK")
</pallas_src>

<mosaic_0001>
module attributes {stable_mosaic.version = 11 : i64} {
  func.func @_fused_levels_kernel(%arg0: i32, %arg1: memref<1x192xf32, #tpu.memory_space<vmem>>, %arg2: memref<1x192xf32, #tpu.memory_space<vmem>>, %arg3: memref<1x96xf32, #tpu.memory_space<vmem>>, %arg4: memref<1x96xf32, #tpu.memory_space<vmem>>, %arg5: memref<1x48xf32, #tpu.memory_space<vmem>>, %arg6: memref<1x48xf32, #tpu.memory_space<vmem>>, %arg7: memref<16x192xf32, #tpu.memory_space<vmem>>, %arg8: memref<8x96xf32, #tpu.memory_space<vmem>>, %arg9: memref<4x48xf32, #tpu.memory_space<vmem>>) attributes {dimension_semantics = [#tpu.dimension_semantics<arbitrary>], iteration_bounds = array<i64: 1>, scalar_prefetch = 0 : i64, scratch_operands = 0 : i64, tpu.core_type = #tpu.core_type<tc>, window_params = [{pipeline_mode = #tpu.pipeline_mode<synchronous>, transform_indices = @transform_0, window_bounds = array<i64: 1, 192>}, {pipeline_mode = #tpu.pipeline_mode<synchronous>, transform_indices = @transform_1, window_bounds = array<i64: 1, 192>}, {pipeline_mode = #tpu.pipeline_mode<synchronous>, transform_indices = @transform_2, window_bounds = array<i64: 1, 96>}, {pipeline_mode = #tpu.pipeline_mode<synchronous>, transform_indices = @transform_3, window_bounds = array<i64: 1, 96>}, {pipeline_mode = #tpu.pipeline_mode<synchronous>, transform_indices = @transform_4, window_bounds = array<i64: 1, 48>}, {pipeline_mode = #tpu.pipeline_mode<synchronous>, transform_indices = @transform_5, window_bounds = array<i64: 1, 48>}, {pipeline_mode = #tpu.pipeline_mode<synchronous>, transform_indices = @transform_6, window_bounds = array<i64: 16, 192>}, {pipeline_mode = #tpu.pipeline_mode<synchronous>, transform_indices = @transform_7, window_bounds = array<i64: 8, 96>}, {pipeline_mode = #tpu.pipeline_mode<synchronous>, transform_indices = @transform_8, window_bounds = array<i64: 4, 48>}]} {
    %c0 = arith.constant 0 : index
    %c0_0 = arith.constant 0 : index
    %0 = vector.load %arg1[%c0, %c0_0] : memref<1x192xf32, #tpu.memory_space<vmem>>, vector<1x192xf32>
    %c0_1 = arith.constant 0 : index
    %c0_2 = arith.constant 0 : index
    %1 = vector.load %arg2[%c0_1, %c0_2] : memref<1x192xf32, #tpu.memory_space<vmem>>, vector<1x192xf32>
    %2 = tpu.iota {dimensions = array<i32: 0>} : vector<16x192xi32>
    %3 = arith.sitofp %2 : vector<16x192xi32> to vector<16x192xf32>
    %4 = vector.broadcast %0 : vector<1x192xf32> to vector<16x192xf32>
    %5 = arith.mulf %3, %4 : vector<16x192xf32>
    %6 = vector.broadcast %1 : vector<1x192xf32> to vector<16x192xf32>
    %7 = arith.addf %5, %6 : vector<16x192xf32>
    %c0_3 = arith.constant 0 : index
    %c0_4 = arith.constant 0 : index
    %8 = vector.load %arg7[%c0_3, %c0_4] : memref<16x192xf32, #tpu.memory_space<vmem>>, vector<16x192xf32>
    tpu.vector_store %arg7[%c0_3, %c0_4], %7 {strides = array<i32>} : memref<16x192xf32, #tpu.memory_space<vmem>>, vector<16x192xf32>,
    %c0_5 = arith.constant 0 : index
    %c0_6 = arith.constant 0 : index
    %9 = vector.load %arg3[%c0_5, %c0_6] : memref<1x96xf32, #tpu.memory_space<vmem>>, vector<1x96xf32>
    %c0_7 = arith.constant 0 : index
    %c0_8 = arith.constant 0 : index
    %10 = vector.load %arg4[%c0_7, %c0_8] : memref<1x96xf32, #tpu.memory_space<vmem>>, vector<1x96xf32>
    %11 = tpu.iota {dimensions = array<i32: 0>} : vector<8x96xi32>
    %12 = arith.sitofp %11 : vector<8x96xi32> to vector<8x96xf32>
    %13 = vector.broadcast %9 : vector<1x96xf32> to vector<8x96xf32>
    %14 = arith.mulf %12, %13 : vector<8x96xf32>
    %15 = vector.broadcast %10 : vector<1x96xf32> to vector<8x96xf32>
    %16 = arith.addf %14, %15 : vector<8x96xf32>
    %c0_9 = arith.constant 0 : index
    %c0_10 = arith.constant 0 : index
    %17 = vector.load %arg8[%c0_9, %c0_10] : memref<8x96xf32, #tpu.memory_space<vmem>>, vector<8x96xf32>
    tpu.vector_store %arg8[%c0_9, %c0_10], %16 {strides = array<i32>} : memref<8x96xf32, #tpu.memory_space<vmem>>, vector<8x96xf32>,
    %c0_11 = arith.constant 0 : index
    %c0_12 = arith.constant 0 : index
    %18 = vector.load %arg5[%c0_11, %c0_12] : memref<1x48xf32, #tpu.memory_space<vmem>>, vector<1x48xf32>
    %c0_13 = arith.constant 0 : index
    %c0_14 = arith.constant 0 : index
    %19 = vector.load %arg6[%c0_13, %c0_14] : memref<1x48xf32, #tpu.memory_space<vmem>>, vector<1x48xf32>
    %20 = tpu.iota {dimensions = array<i32: 0>} : vector<4x48xi32>
    %21 = arith.sitofp %20 : vector<4x48xi32> to vector<4x48xf32>
    %22 = vector.broadcast %18 : vector<1x48xf32> to vector<4x48xf32>
    %23 = arith.mulf %21, %22 : vector<4x48xf32>
    %24 = vector.broadcast %19 : vector<1x48xf32> to vector<4x48xf32>
    %25 = arith.addf %23, %24 : vector<4x48xf32>
    %c0_15 = arith.constant 0 : index
    %c0_16 = arith.constant 0 : index
    %26 = vector.load %arg9[%c0_15, %c0_16] : memref<4x48xf32, #tpu.memory_space<vmem>>, vector<4x48xf32>
    tpu.vector_store %arg9[%c0_15, %c0_16], %25 {strides = array<i32>} : memref<4x48xf32, #tpu.memory_space<vmem>>, vector<4x48xf32>,
    return
  }
  func.func @transform_0(%arg0: i32) -> (i32, i32) {
    %c0_i32 = arith.constant 0 : i32
    %c0_i32_0 = arith.constant 0 : i32
    %c0_i32_1 = arith.constant 0 : i32
    return %c0_i32, %c0_i32_0 : i32, i32
  }
  func.func @transform_1(%arg0: i32) -> (i32, i32) {
    %c0_i32 = arith.constant 0 : i32
    %c0_i32_0 = arith.constant 0 : i32
    %c0_i32_1 = arith.constant 0 : i32
    return %c0_i32, %c0_i32_0 : i32, i32
  }
  func.func @transform_2(%arg0: i32) -> (i32, i32) {
    %c0_i32 = arith.constant 0 : i32
    %c0_i32_0 = arith.constant 0 : i32
    %c0_i32_1 = arith.constant 0 : i32
    return %c0_i32, %c0_i32_0 : i32, i32
  }
  func.func @transform_3(%arg0: i32) -> (i32, i32) {
    %c0_i32 = arith.constant 0 : i32
    %c0_i32_0 = arith.constant 0 : i32
    %c0_i32_1 = arith.constant 0 : i32
    return %c0_i32, %c0_i32_0 : i32, i32
  }
  func.func @transform_4(%arg0: i32) -> (i32, i32) {
    %c0_i32 = arith.constant 0 : i32
    %c0_i32_0 = arith.constant 0 : i32
    %c0_i32_1 = arith.constant 0 : i32
    return %c0_i32, %c0_i32_0 : i32, i32
  }
  func.func @transform_5(%arg0: i32) -> (i32, i32) {
    %c0_i32 = arith.constant 0 : i32
    %c0_i32_0 = arith.constant 0 : i32
    %c0_i32_1 = arith.constant 0 : i32
    return %c0_i32, %c0_i32_0 : i32, i32
  }
  func.func @transform_6(%arg0: i32) -> (i32, i32) {
    %c0_i32 = arith.constant 0 : i32
    %c0_i32_0 = arith.constant 0 : i32
    %c0_i32_1 = arith.constant 0 : i32
    return %c0_i32, %c0_i32_0 : i32, i32
  }
  func.func @transform_7(%arg0: i32) -> (i32, i32) {
    %c0_i32 = arith.constant 0 : i32
    %c0_i32_0 = arith.constant 0 : i32
    %c0_i32_1 = arith.constant 0 : i32
    return %c0_i32, %c0_i32_0 : i32, i32
  }
  func.func @transform_8(%arg0: i32) -> (i32, i32) {
    %c0_i32 = arith.constant 0 : i32
    %c0_i32_0 = arith.constant 0 : i32
    %c0_i32_1 = arith.constant 0 : i32
    return %c0_i32, %c0_i32_0 : i32, i32
  }
}

</mosaic_0001>

<bundles_post_ra>
// kernel: tpu_custom_call.1
= control target key start
LH: loop header
LB: loop body
LE: loop exit
PB: predicated region body
PF: predicated region fallthrough
CT: control target
= control target key end

     0   :  { %14 = vsyncpa [#allocation3], 0  ;;  %s398_s0 = inlined_call_operand.hbm [shape: f32[1,192], index: 0, kind: input, shape index: {}]   ;;  %s399_s1 = inlined_call_operand.vmem [shape: f32[1,192], index: 1, kind: input, shape index: {}]   ;;  %s400_s2 = inlined_call_operand.vmem [shape: f32[1,96], index: 2, kind: input, shape index: {}]   ;;  %s401_s3 = inlined_call_operand.vmem [shape: f32[1,96], index: 3, kind: input, shape index: {}]   ;;  %s402_s4 = inlined_call_operand.vmem [shape: f32[1,48], index: 4, kind: input, shape index: {}]   ;;  %s403_s5 = inlined_call_operand.vmem [shape: f32[1,48], index: 5, kind: input, shape index: {}]   ;;  %s404_s6 = inlined_call_operand.hbm [shape: f32[16,192], index: 6, kind: output, shape index: {0}]   ;;  %s405_s7 = inlined_call_operand.hbm [shape: f32[8,96], index: 7, kind: output, shape index: {1}]   ;;  %s406_s8 = inlined_call_operand.hbm [shape: f32[4,48], index: 8, kind: output, shape index: {2}]  }
   0x1   :  { %15 = vsyncpa [#allocation4], 0 }
   0x2   :  { %16 = vsyncpa [#allocation7], 0  ;;  %s266_s27 = smov [#allocation2]   ;;  %s172_s9 = scalar_lea.hbm %s398_s0, 32 }
   0x3   :  { %s23_s28 = sshll.u32 %s266_s27, 4  ;;  %p173_p0 = scmp.ne.s32.totalorder %s398_s0, %s172_s9  ;;  %s24_s28 = int_to_ptr.vmem [resolvable:$true] %s23_s28 }
   0x4   :  { %p176_p1 = scmp.lt.u32.totalorder %s172_s9, %s398_s0 }
   0x6   :  { %p178_p2 = pnand %p176_p1, %p173_p0 }
   0x8   :  { %181 = shalt.err (!%p178_p2)
}
   0x9   :  { %s182_s14 = scalar_lea.vmem %s24_s28, 32  ;;  %p187_p4 = scmp.lt.s32.totalorder %s24_s28, %s24_s28 }
   0xa   :  { %p183_p3 = scmp.ne.s32.totalorder %s24_s28, %s182_s14  ;;  %p188_p5 = scmp.lt.s32.totalorder %s182_s14, %s182_s14 }
   0xc   :  { %p189_p6 = por %p188_p5, %p187_p4 }
   0xe   :  { %p190_p7 = pnand %p189_p6, %p183_p3 }
  0x10   :  { %193 = shalt.err (!%p190_p7)
}
  0x11   :  { %26 = dma.hbm_to_vmem [thread:$0]  %s398_s0, 32, %s24_s28, [#allocation3]  }
  0x12   :  { %260 = dma.done.wait [#allocation3], 32  }
  0x13   :  { %261 = vsyncadd [#allocation3], 4294967264  ;;  %v42_v0 = vlaneseq  ;;  %s267_s17 = smov [#allocation6]   ;;  %vm98_vm0 = vcmask 785408   ;;  %s268_s19 = smov [#allocation5]   ;;  %vm116_vm1 = vcmask 388096  }
  0x14   :  { %s136_s18 = sshll.u32 %s267_s17, 4  ;;  %s123_s20 = sshll.u32 %s268_s19, 4  ;;  %v162_v7 = vld [vmem:[%s400_s2] ss:$0 sm:$0xff]  ;;  %vm78_vm2 = vcmask 523264   ;;  %s137_s18 = int_to_ptr.vmem [resolvable:$true] %s136_s18  ;;  %s344_s20 = int_to_ptr.vmem [resolvable:$true] %s123_s20 }
  0x15   :  { %v43_v1 = vshrl.u32 %v42_v0, 7  ;;  %s269_s21 = smov [#allocation8]   ;;  %v163_v8 = vld [vmem:[%s401_s3] ss:$0 sm:$0xff]  ;;  %p199_p9 = scmp.lt.s32.totalorder %s137_s18, %s137_s18 }
  0x16   :  { %s146_s22 = sshll.u32 %s269_s21, 4  ;;  %v40_v9 = vld [vmem:[#allocation2] sm:$0x3]  ;;  %s346_s22 = int_to_ptr.vmem [resolvable:$true] %s146_s22 }
  0x17   :  { %v45_v2 = vcvt.s32.f32 %v43_v1  ;;  %v50_v3 = vsub.s32 0, %v43_v1  ;;  %v54_v4 = vsub.s32 1, %v43_v1  ;;  %v44_v5 = vadd.s32 8, %v43_v1  ;;  %v41_v11 = vld [vmem:[%s399_s1] sm:$0x3]  ;;  %s194_s1 = scalar_lea.vmem %s137_s18, 128 }
  0x18   :  { %v164_v14 = vld [vmem:[%s402_s4] ss:$0 sm:$0xff]  ;;  %p195_p8 = scmp.ne.s32.totalorder %s137_s18, %s194_s1  ;;  %p200_p10 = scmp.lt.s32.totalorder %s194_s1, %s194_s1 }
  0x19   :  { %v46_v6 = vcvt.s32.f32 %v44_v5  ;;  %v90_v10 = vmul.f32 %v162_v7, %v45_v2  ;;  %v51_v12 = vrot.slane %v40_v9, %v50_v3  ;;  %v55_v13 = vrot.slane %v40_v9, %v54_v4  ;;  %v165_v15 = vld [vmem:[%s403_s5] ss:$0 sm:$0xff] }
  0x1a   :  { %v66_v16 = vrot.slane %v41_v11, %v50_v3  ;;  %v70_v17 = vrot.slane %v41_v11, %v54_v4  ;;  %v108_v18 = vmul.f32 %v164_v14, %v45_v2  ;;  %p201_p11 = por %p200_p10, %p199_p9 }
  0x1b   :  { %v97_v19 = vadd.f32 %v163_v8, %v90_v10  ;;  %v58_v20 = vmul.f32 %v51_v12, %v45_v2  ;;  %v59_v21 = vmul.f32 %v55_v13, %v45_v2  ;;  %v60_v22 = vmul.f32 %v51_v12, %v46_v6 }
  0x1c   :  { %v61_v23 = vmul.f32 %v55_v13, %v46_v6  ;;  %v115_v24 = vadd.f32 %v165_v15, %v108_v18  ;;  %p202_p12 = pnand %p201_p11, %p195_p8 }
  0x1d   :  { %99 = vst.msk [vmem:[#allocation6] sm:$0xff] %vm98_vm0, %v97_v19  ;;  %v73_v25 = vadd.f32 %v66_v16, %v58_v20  ;;  %v74_v26 = vadd.f32 %v70_v17, %v59_v21  ;;  %v75_v27 = vadd.f32 %v66_v16, %v60_v22 }
  0x1e   :  { %v76_v28 = vadd.f32 %v70_v17, %v61_v23  ;;  %117 = vst.msk [vmem:[#allocation8] sm:$0xf] %vm116_vm1, %v115_v24 }
  0x1f   :  { %205 = shalt.err (!%p202_p12)
}
  0x20   :  { %s206_s4 = scalar_lea.hbm %s405_s7, 128 }
  0x21   :  { %p207_p13 = scmp.ne.s32.totalorder %s405_s7, %s206_s4  ;;  %p210_p0 = scmp.lt.u32.totalorder %s206_s4, %s405_s7 }
  0x23   :  { %p212_p1 = pnand %p210_p0, %p207_p13 }
  0x25   :  { %215 = shalt.err (!%p212_p1)
}
  0x26   :  { %139 = dma.vmem_to_hbm [thread:$0]  %s137_s18, 128, %s405_s7, [#allocation7]   ;;  %77 = vst [vmem:[#allocation5] sm:$0xff] %v73_v25  ;;  %79 = vst.msk [vmem:[#allocation5 + $0x8] sm:$0xff] %vm78_vm2, %v74_v26 }
  0x27   :  { %80 = vst [vmem:[#allocation5 + $0x10] sm:$0xff] %v75_v27  ;;  %s216_s15 = scalar_lea.vmem %s346_s22, 64  ;;  %p221_p3 = scmp.lt.s32.totalorder %s346_s22, %s346_s22 }
  0x28   :  { %p217_p2 = scmp.ne.s32.totalorder %s346_s22, %s216_s15  ;;  %p222_p4 = scmp.lt.s32.totalorder %s216_s15, %s216_s15 }
  0x2a   :  { %p223_p5 = por %p222_p4, %p221_p3 }
  0x2c   :  { %p224_p6 = pnand %p223_p5, %p217_p2 }
  0x2e   :  { %227 = shalt.err (!%p224_p6)
}
  0x2f   :  { %s228_s19 = scalar_lea.hbm %s406_s8, 64 }
  0x30   :  { %p229_p7 = scmp.ne.s32.totalorder %s406_s8, %s228_s19  ;;  %p232_p8 = scmp.lt.u32.totalorder %s228_s19, %s406_s8 }
  0x32   :  { %p234_p9 = pnand %p232_p8, %p229_p7 }
  0x34   :  { %237 = shalt.err (!%p234_p9)
}
  0x35   :  { %149 = dma.vmem_to_hbm [thread:$0]  %s346_s22, 64, %s406_s8, [#allocation7]   ;;  %81 = vst.msk [vmem:[#allocation5 + $0x18] sm:$0xff] %vm78_vm2, %v76_v28 }
  0x36   :  { %s238_s25 = scalar_lea.vmem %s344_s20, 512  ;;  %p243_p11 = scmp.lt.s32.totalorder %s344_s20, %s344_s20 }
  0x37   :  { %p239_p10 = scmp.ne.s32.totalorder %s344_s20, %s238_s25  ;;  %p244_p12 = scmp.lt.s32.totalorder %s238_s25, %s238_s25 }
  0x39   :  { %p245_p13 = por %p244_p12, %p243_p11 }
  0x3b   :  { %p246_p0 = pnand %p245_p13, %p239_p10 }
  0x3d   :  { %249 = shalt.err (!%p246_p0)
}
  0x3e   :  { %s250_s28 = scalar_lea.hbm %s404_s6, 512 }
  0x3f   :  { %p251_p1 = scmp.ne.s32.totalorder %s404_s6, %s250_s28  ;;  %p254_p2 = scmp.lt.u32.totalorder %s250_s28, %s404_s6 }
  0x41   :  { %p256_p3 = pnand %p254_p2, %p251_p1 }
  0x43   :  { %259 = shalt.err (!%p256_p3)
}
  0x44   :  { %s270_s22 = smov 256   ;;  %s271_s1 = smov 16  }
  0x45   :  { %129 = dma.vmem_to_hbm [thread:$0]  %s344_s20, 512, %s404_s6, [#allocation4], %s270_s22, %s270_s22, %s271_s1  }
  0x46   :  { %262 = dma.done.wait [#allocation4], 512  }
  0x47   :  { %263 = vsyncadd [#allocation4], 4294966784 }
  0x48   :  { %264 = dma.done.wait [#allocation7], 192  }
  0x49   :  { %265 = vsyncadd [#allocation7], 4294967104 }
  0x4a   :  { %159 = vsyncpa [#allocation3], 1 }
  0x4b   :  { %160 = vsyncpa [#allocation4], 1 }
  0x4c   :  { %161 = vsyncpa [#allocation7], 1 }

</bundles_post_ra>
